<compile_context>
chip_gen: v7x
topology: tpu7x:2x2x1
jax: 0.10.0
libtpu: 0.0.40
codegen_flags: <defaults>
</compile_context>

<pallas_src>
import math

import jax
import jax.numpy as jnp
from jax import lax
from jax.experimental import pallas as pl
from jax.experimental.pallas import tpu as pltpu


# ----------------------------------------------------------------------------
# Kernel
# ----------------------------------------------------------------------------

def _layernorm_kernel(scalars_ref, x_ref, o_ref):
    """One (TR, D) row tile per grid step.

    scalars_ref : SMEM (2,) f32  = [alpha / eps, bias]
    x_ref, o_ref: VMEM (TR, D) blocks.
    """
    x = x_ref[...]
    xf = x.astype(jnp.float32)                   # stats always in f32
    d = x.shape[-1]

    # Single-pass row statistics: one VMEM traversal yields both sums.
    s1 = jnp.sum(xf, axis=-1, keepdims=True)                      # [TR, 1]
    s2 = jnp.sum(xf * xf, axis=-1, keepdims=True)                 # [TR, 1]
    mean = s1 * (1.0 / d)
    # Unbiased variance (torch.std default, ddof=1):  (sum(x^2) - d*mean^2)/(d-1)
    var = (s2 - mean * s1) * (1.0 / max(d - 1, 1))
    var = jnp.maximum(var, 0.0)                  # guard E[x^2]-mean^2 cancellation

    # 1/std on the EUP (rsqrt); alpha/eps folded into the per-row scale, and
    # mean folded into the per-row shift -> output pass is one mul + one add.
    inv = lax.rsqrt(var) * scalars_ref[0]        # [TR, 1]
    shift = scalars_ref[1] - mean * inv          # [TR, 1]

    if x.dtype == jnp.bfloat16:
        # Scale/shift in bf16 (native VPU on v6e/v7x; emulated but correct on v5e).
        o_ref[...] = (x * inv.astype(x.dtype) + shift.astype(x.dtype)).astype(o_ref.dtype)
    else:
        o_ref[...] = (xf * inv + shift).astype(o_ref.dtype)


# ----------------------------------------------------------------------------
# Wrapper
# ----------------------------------------------------------------------------

_VMEM_LIMIT_BYTES = 32 * 1024 * 1024           # explicit: lifts v5e's 16 MiB default,
                                               # matches v6e/v7x defaults, < v7x physical.


def _sublane_multiple(itemsize):
    # Sublane packing: 8 rows per vreg for 32-bit, 16 for 16-bit, 32 for 8-bit.
    return {1: 32, 2: 16, 4: 8}.get(itemsize, 8)


def _pick_row_tile(rows, d, itemsize, *, target_block_bytes=2 << 20,
                   vmem_budget=24 * 1024 * 1024, min_steps=8):
    """Row tile sized toward ~2 MiB blocks (HBM-roofline plateau), bounded by a
    conservative live-VMEM estimate and by a minimum grid-step count so the
    auto-pipeline / megacore have work to overlap."""
    sub = _sublane_multiple(itemsize)

    # Conservative live bytes per tile row: 4 dtype-sized buffers (in + out,
    # each double-buffered) plus ~2 f32 rows of compiler temporaries.
    per_row_live = d * (4 * itemsize + 2 * 4)
    cap_rows = max(sub, vmem_budget // per_row_live)

    # Target block size for bandwidth, and enough steps for pipelining.
    tgt_rows = max(sub, target_block_bytes // (d * itemsize))
    steps_rows = max(sub, rows // min_steps)

    tr = min(cap_rows, tgt_rows, steps_rows, rows)
    if tr >= rows:
        return rows                              # one block == full array (always legal)
    return max(sub, (tr // sub) * sub)           # dtype-aligned sublane tile
    # TODO(synk): for enormous D (per_row_live * sub > vmem_budget) a feature-dim
    # tiling / reduced-buffering fallback would be needed; not hit for real configs.


def layer_normalization(x, alpha, bias, eps=1e-6):
    orig_shape = x.shape
    d = orig_shape[-1]
    rows = math.prod(orig_shape[:-1])
    x2d = x.reshape(rows, d)

    # TODO(synk): if d is not a multiple of 128 the output stores become masked
    # partial stores; a lane-dense pad/reshape in the wrapper would recover that.
    tr = _pick_row_tile(rows, d, x2d.dtype.itemsize)
    grid = (pl.cdiv(rows, tr),)

    # Fold alpha / eps once on the host; both scalars live in SMEM.
    scalars = jnp.stack([
        jnp.asarray(alpha, jnp.float32).reshape(()) / jnp.float32(eps),
        jnp.asarray(bias, jnp.float32).reshape(()),
    ])

    y = pl.pallas_call(
        _layernorm_kernel,
        out_shape=jax.ShapeDtypeStruct((rows, d), x2d.dtype),
        grid=grid,
        in_specs=[
            pl.BlockSpec(memory_space=pltpu.MemorySpace.SMEM),   # [alpha/eps, bias]
            pl.BlockSpec((tr, d), lambda i: (i, 0)),
        ],
        out_specs=pl.BlockSpec((tr, d), lambda i: (i, 0)),
        compiler_params=pltpu.CompilerParams(
            dimension_semantics=("parallel",),                   # megacore on v7x
            vmem_limit_bytes=_VMEM_LIMIT_BYTES),
    )(scalars, x2d)
    return y.reshape(orig_shape)


# ----------------------------------------------------------------------------
# Main
# ----------------------------------------------------------------------------

if __name__ == "__main__":
    # rows = B*S = 256 -> 8 grid steps of 32 rows (exercises the pipeline and
    # megacore sharding while staying small).
    B, S, D = 4, 64, 256
    EPS = 1e-6

    key = jax.random.PRNGKey(0)
    x = jax.random.normal(key, (B, S, D), dtype=jnp.float32)

    alpha = jnp.ones((1,), jnp.float32)      # nn.Parameter(torch.ones(1))
    bias = jnp.zeros((1,), jnp.float32)      # nn.Parameter(torch.zeros(1))

    out = layer_normalization(x, alpha, bias, EPS)
    out = jax.block_until_ready(out)

    # Pure-JAX reference of the literal formula (unbiased std, divide by std*eps).
    mean = jnp.mean(x, axis=-1, keepdims=True)
    std = jnp.std(x, axis=-1, keepdims=True, ddof=1)
    ref = alpha * (x - mean) / (std * EPS) + bias

    assert out.shape == x.shape
    assert bool(jnp.all(jnp.isfinite(out)))
    rel_err = float(jnp.max(jnp.abs(out - ref)) / (jnp.max(jnp.abs(ref)) + 1e-30))
    assert rel_err < 1e-4, f"relative error too large: {rel_err}"
    print("KERNEL_OK")
</pallas_src>

<mosaic_0001>
module attributes {stable_mosaic.version = 11 : i64} {
  func.func @_layernorm_kernel(%arg0: i32, %arg1: memref<2xf32, #tpu.memory_space<smem>>, %arg2: memref<32x256xf32, #tpu.memory_space<vmem>>, %arg3: memref<32x256xf32, #tpu.memory_space<vmem>>) attributes {dimension_semantics = [#tpu.dimension_semantics<parallel>], iteration_bounds = array<i64: 8>, scalar_prefetch = 0 : i64, scratch_operands = 0 : i64, tpu.core_type = #tpu.core_type<tc>, window_params = [{transform_indices = @transform_0, window_bounds = array<i64: 2>}, {transform_indices = @transform_1, window_bounds = array<i64: 32, 256>}, {transform_indices = @transform_2, window_bounds = array<i64: 32, 256>}]} {
    %c0 = arith.constant 0 : index
    %c0_0 = arith.constant 0 : index
    %0 = vector.load %arg2[%c0, %c0_0] : memref<32x256xf32, #tpu.memory_space<vmem>>, vector<32x256xf32>
    %cst = arith.constant dense<0.000000e+00> : vector<32xf32>
    %1 = vector.multi_reduction <add>, %0, %cst [1] : vector<32x256xf32> to vector<32xf32>
    %2 = vector.shape_cast %1 : vector<32xf32> to vector<32x1xf32>
    %3 = arith.mulf %0, %0 : vector<32x256xf32>
    %cst_1 = arith.constant dense<0.000000e+00> : vector<32xf32>
    %4 = vector.multi_reduction <add>, %3, %cst_1 [1] : vector<32x256xf32> to vector<32xf32>
    %5 = vector.shape_cast %4 : vector<32xf32> to vector<32x1xf32>
    %cst_2 = arith.constant 3.906250e-03 : f32
    %6 = vector.broadcast %cst_2 : f32 to vector<32x1xf32>
    %7 = arith.mulf %2, %6 : vector<32x1xf32>
    %8 = arith.mulf %7, %2 : vector<32x1xf32>
    %9 = arith.subf %5, %8 : vector<32x1xf32>
    %cst_3 = arith.constant 0.00392156886 : f32
    %10 = vector.broadcast %cst_3 : f32 to vector<32x1xf32>
    %11 = arith.mulf %9, %10 : vector<32x1xf32>
    %cst_4 = arith.constant 0.000000e+00 : f32
    %12 = vector.broadcast %cst_4 : f32 to vector<32x1xf32>
    %13 = arith.maximumf %11, %12 : vector<32x1xf32>
    %14 = math.rsqrt %13 : vector<32x1xf32>
    %c0_5 = arith.constant 0 : index
    %15 = memref.load %arg1[%c0_5] : memref<2xf32, #tpu.memory_space<smem>>
    %16 = vector.broadcast %15 : f32 to vector<32x1xf32>
    %17 = arith.mulf %14, %16 : vector<32x1xf32>
    %c1 = arith.constant 1 : index
    %18 = memref.load %arg1[%c1] : memref<2xf32, #tpu.memory_space<smem>>
    %19 = arith.mulf %7, %17 : vector<32x1xf32>
    %20 = vector.broadcast %18 : f32 to vector<32x1xf32>
    %21 = arith.subf %20, %19 : vector<32x1xf32>
    %22 = vector.broadcast %17 : vector<32x1xf32> to vector<32x256xf32>
    %23 = arith.mulf %0, %22 : vector<32x256xf32>
    %24 = vector.broadcast %21 : vector<32x1xf32> to vector<32x256xf32>
    %25 = arith.addf %23, %24 : vector<32x256xf32>
    %c0_6 = arith.constant 0 : index
    %c0_7 = arith.constant 0 : index
    %26 = vector.load %arg3[%c0_6, %c0_7] : memref<32x256xf32, #tpu.memory_space<vmem>>, vector<32x256xf32>
    tpu.vector_store %arg3[%c0_6, %c0_7], %25 {strides = array<i32>} : memref<32x256xf32, #tpu.memory_space<vmem>>, vector<32x256xf32>,
    return
  }
  func.func @transform_0(%arg0: i32) -> i32 {
    %c0_i32 = arith.constant 0 : i32
    %c0_i32_0 = arith.constant 0 : i32
    return %c0_i32 : i32
  }
  func.func @transform_1(%arg0: i32) -> (i32, i32) {
    %c0_i32 = arith.constant 0 : i32
    %c0_i32_0 = arith.constant 0 : i32
    return %arg0, %c0_i32 : i32, i32
  }
  func.func @transform_2(%arg0: i32) -> (i32, i32) {
    %c0_i32 = arith.constant 0 : i32
    %c0_i32_0 = arith.constant 0 : i32
    return %arg0, %c0_i32 : i32, i32
  }
}

</mosaic_0001>

<bundles_post_ra>
// kernel: tpu_custom_call.1
= control target key start
LH: loop header
LB: loop body
LE: loop exit
PB: predicated region body
PF: predicated region fallthrough
CT: control target
= control target key end

     0   :  { %7 = vsyncpa [#allocation5], 0  ;;  %s850_s0 = inlined_call_operand.hbm [shape: f32[2], index: 0, kind: input, shape index: {}]   ;;  %s851_s1 = inlined_call_operand.hbm [shape: f32[256,256], index: 1, kind: input, shape index: {}]   ;;  %s852_s2 = inlined_call_operand.hbm [shape: f32[256,256], index: 2, kind: output, shape index: {}]  }
   0x1   :  { %8 = vsyncpa [#allocation3], 0 }
   0x2   :  { %10 = vsyncpa [#allocation3 + $0x1], 0 }
   0x3   :  { %11 = vsyncpa [#allocation4], 0 }
   0x4   :  { %13 = vsyncpa [#allocation4 + $0x1], 0  ;;  %s610_s9 = smov 0   ;;  %s612_s10 = smov 0  }
   0x5   :  { %s614_s11 = smov 0   ;;  %s616_s12 = smov 0  }
   0x6 LB: > { %s631_s13 = sadd.s32 4294967295, %s586_s12   ;;  %s381_s14 = sadd.s32 4294967294, %s586_s12   ;;  %s586_s12 = sphi %s616_s12, %s870_s12   ;;  %s582_s11 = sphi %s614_s11, %s869_s11   ;;  %s578_s10 = sphi %s612_s10, %s868_s10   ;;  %s574_s9 = sphi %s610_s9, %s867_s9  }
   0x7   : > { %s635_s15 = sadd.s32 1, %s586_s12   ;;  %s47_s16 = sadd.s32 1, %s582_s11 }
   0x8   : > { %s44_s17 = ssub.s32 %s586_s12, %s635_s15  ;;  %p54_p0 = scmp.ne.s32.totalorder %s582_s11, %s578_s10 }
   0x9   : > { %p45_p1 = scmp.eq.s32.totalorder %s44_s17, 0  ;;  %p55_p2 = scmp.eq.s32.totalorder %s586_s12, 0 }
   0xa   : > { %p60_p3 = scmp.ne.s32.totalorder %s578_s10, %s574_s9  ;;  %p854_p4 = scmp.eq.s32.totalorder %s631_s13, 0 }
   0xb   : > { %s647_s18 = scalar_select %p45_p1, %s582_s11, %s47_s16  }
   0xc   : > { %p649_p5 = por %p55_p2, %p54_p0  ;;  %p655_p6 = por %p854_p4, %p60_p3 }
   0xd   : > { %p84_p7 = scmp.eq.s32.totalorder %s631_s13, 7  ;;  %p90_p8 = scmp.eq.s32.totalorder %s381_s14, 7 }
   0xe   : > { %s857_s20 = scalar_select %p655_p6, 1, 0 }
   0xf   : > { %p382_p9 = scmp.ge.s32.totalorder %s586_s12, 1  ;;  %p97_p10 = scmp.lt.s32.totalorder %s586_s12, 9 }
  0x10   : > { %p662_p11 = por %p84_p7, %p54_p0  ;;  %p666_p12 = por %p90_p8, %p60_p3 }
  0x11   : > { %p670_p13 = pnand %p382_p9, %p97_p10  ;;  %p425_p2 = scmp.lt.s32.totalorder %s586_s12, 8 }
  0x12   : > { %s858_s21 = scalar_select %p662_p11, 1, 0 }
  0x13   : > { %s859_s22 = scalar_select %p666_p12, 1, 0 }
  0x14   : > { %p412_p1 = pneg %p670_p13  ;;  %s119_s24 = sand.u32 1, %s582_s11  }
  0x15   : > { %s401_s25 = sshll.u32 %s586_s12, 10  ;;  %p683_p0 = pnand %p425_p2, %p649_p5 }
  0x16   : > { %p413_p6 = pnand %p412_p1, %p854_p4  ;;  %s385_s27 = sshll.u32 %s119_s24, 6 }
  0x17   : > { %s473_s30 = scalar_lea.hbm %s850_s0, 16 }
  0x18   : > { %p474_p3 = scmp.ne.s32.totalorder %s850_s0, %s473_s30  ;;  %p475_p7 = pneg %p413_p6 }
  0x19   : > { %p480_p10 = scmp.lt.u32.totalorder %s473_s30, %s850_s0 }
  0x1a   : > { %p476_p8 = pnand %p475_p7, %p474_p3 }
  0x1c   : > { %p477_p9 = pneg %p476_p8 }
  0x1e   : > { %p482_p5 = pnand %p480_p10, %p477_p9 }
  0x20   : > { %485 = shalt.err (!%p482_p5)
}
  0x21   : > { %s588_s7 = smov [#allocation2]   ;;  %s702_s19 = scalar_lea.hbm %s851_s1, %s401_s25 }
  0x22   : > { %415 = dma.hbm_to_smem (!%p413_p6), %s850_s0, 16, %s588_s7, [#allocation5]  }
  0x23   : > { %s123_s28 = scalar_lea.vmem [#allocation6], %s385_s27  ;;  %s706_s30 = scalar_lea.sflag [#allocation3], %s119_s24 }
  0x24   : > { %s131_s29 = sshll.u32 %s123_s28, 4  ;;  %s486_s3 = scalar_lea.hbm %s702_s19, 1024  ;;  %s704_s29 = int_to_ptr.vmem [resolvable:$true] %s131_s29 }
  0x25   : > { %p487_p1 = scmp.ne.s32.totalorder %s702_s19, %s486_s3  ;;  %p488_p2 = pneg %p683_p0 }
  0x26   : > { %s491_s5 = scalar_lea.hbm %s851_s1, 8192  ;;  %p492_p7 = scmp.lt.u32.totalorder %s702_s19, %s851_s1 }
  0x27   : > { %p489_p6 = pnand %p488_p2, %p487_p1  ;;  %p493_p8 = scmp.lt.u32.totalorder %s491_s5, %s486_s3 }
  0x28   : > { %p495_p10 = scmp.lt.u32.totalorder %s486_s3, %s702_s19 }
  0x29   : > { %p490_p3 = pneg %p489_p6  ;;  %p494_p9 = por %p493_p8, %p492_p7 }
  0x2b   : > { %p496_p5 = por %p495_p10, %p494_p9 }
  0x2d   : > { %p497_p4 = pnand %p496_p5, %p490_p3 }
  0x2f   : > { %500 = shalt.err (!%p497_p4)
}
  0x30   : > { %s501_s24 = scalar_lea.vmem %s704_s29, 1024  ;;  %s589_s27 = smov [#allocation6]  }
  0x31   : > { %p502_p1 = scmp.ne.s32.totalorder %s704_s29, %s501_s24  ;;  %s506_s8 = sshll.u32 %s589_s27, 4  ;;  %s507_s8 = int_to_ptr.vmem [resolvable:$false] %s506_s8 }
  0x32   : > { %s508_s14 = scalar_lea.vmem %s507_s8, 2048  ;;  %p509_p11 = scmp.lt.s32.totalorder %s704_s29, %s507_s8 }
  0x33   : > { %p504_p6 = pnand %p502_p1, %p488_p2  ;;  %p510_p7 = scmp.lt.s32.totalorder %s508_s14, %s501_s24 }
  0x35   : > { %p505_p12 = pneg %p504_p6  ;;  %p511_p8 = por %p510_p7, %p509_p11 }
  0x37   : > { %p512_p9 = pnand %p511_p8, %p505_p12 }
  0x39   : > { %515 = shalt.err (!%p512_p9)
}
  0x3a   : > { %s590_s16 = smov 256   ;;  %s591_s17 = smov 16  }
  0x3b   : > { %419 = dma.hbm_to_vmem [thread:$0]  (!%p683_p0), %s702_s19, 1024, %s704_s29, %s706_s30, %s590_s16, %s590_s16, %s591_s17  }
  0x3c   : > { %143 = sbr.rel (%p670_p13) target bundleno = 272 (0x110), region = 28  ;;  %p862_p4 = scmp.eq.s32.totalorder (!%p670_p13), %s631_s13, 0 }
  0x43   : > { %561 = dma.done.wait (%p862_p4), [#allocation5], 16   ;;  %p863_p2 = pmov %p862_p4 }
  0x44   : > { %s741_s28 = sand.u32 1, %s578_s10   ;;  %p864_p11 = scmp.ne.s32.totalorder %s857_s20, 0 }
  0x45   : > { %563 = vsyncadd (%p863_p2), [#allocation5], 4294967280  ;;  %s391_s3 = sshll.u32 %s741_s28, 6  ;;  %s150_s25 = scalar_lea.sflag [#allocation3], %s741_s28 }
  0x46   : > { %s153_s26 = scalar_lea.vmem [#allocation6], %s391_s3 }
  0x47   : > { %565 = dma.done.wait (%p864_p11), %s150_s25, 1024  }
  0x48   : > { %567 = vsyncadd (%p864_p11), %s150_s25, 4294966272 }
  0x49   : > { %158 = sfence }
  0x4a   : > { %v751_v0 = vld [vmem:[%s153_s26 + $0x20] sm:$0xff]  ;;  %v753_v1 = vld [vmem:[%s153_s26 + $0x28] sm:$0xff]  ;;  %v761_v5 = vld [vmem:[%s153_s26 + $0x30] sm:$0xff]  ;;  %s241_s20 = sld [smem:[#allocation2]]  ;;  %s393_s23 = sld [smem:[#allocation2 + $0x1]] }
  0x4b   : > { %v755_v2 = vld [vmem:[%s153_s26] sm:$0xff]  ;;  %v191_v3 = vadd.f32 %v753_v1, %v751_v0  ;;  %v759_v4 = vld [vmem:[%s153_s26 + $0x8] sm:$0xff]  ;;  %v763_v6 = vld [vmem:[%s153_s26 + $0x38] sm:$0xff]  ;;  %v203_v17 = vmul.f32 %v761_v5, %v761_v5  ;;  %v201_v20 = vmul.f32 %v751_v0, %v751_v0  ;;  %v202_v21 = vmul.f32 %v753_v1, %v753_v1  ;;  %s403_s19 = sshll.u32 %s631_s13, 10  ;;  %s174_s29 = scalar_lea.vmem [#allocation7], %s391_s3 }
  0x4c   : > { %v185_v7 = vadd.f32 %v759_v4, %v755_v2  ;;  %v767_v8 = vld [vmem:[%s153_s26 + $0x10] sm:$0xff]  ;;  %v769_v9 = vld [vmem:[%s153_s26 + $0x18] sm:$0xff]  ;;  %v194_v10 = vadd.f32 %v763_v6, %v761_v5  ;;  %v197_v14 = vmul.f32 %v755_v2, %v755_v2  ;;  %v198_v15 = vmul.f32 %v759_v4, %v759_v4  ;;  %s296_s30 = sshll.u32 %s174_s29, 4  ;;  %s805_s5 = scalar_lea.hbm %s852_s2, %s403_s19  ;;  %s807_s30 = int_to_ptr.vmem [resolvable:$true] %s296_s30 }
  0x4d   : > { %192 = vadd.xlane.f32.xlu1 %v191_v3  ;;  %v199_v11 = vmul.f32 %v767_v8, %v767_v8  ;;  %v200_v12 = vmul.f32 %v769_v9, %v769_v9  ;;  %v188_v13 = vadd.f32 %v769_v9, %v767_v8  ;;  %v204_v18 = vmul.f32 %v763_v6, %v763_v6  ;;  %s282_s6 = scalar_lea.sflag [#allocation4], %s741_s28  ;;  %s516_s7 = scalar_lea.vmem %s807_s30, 1024 }
  0x4e   : > { %186 = vadd.xlane.f32.xlu0 %v185_v7  ;;  %v205_v19 = vadd.f32 %v198_v15, %v197_v14  ;;  %v211_v23 = vadd.f32 %v202_v21, %v201_v20  ;;  %p517_p12 = scmp.ne.s32.totalorder %s807_s30, %s516_s7  ;;  %p865_p13 = scmp.ne.s32.totalorder %s858_s21, 0 }
  0x4f   : > { %v208_v16 = vadd.f32 %v200_v12, %v199_v11  ;;  %v214_v22 = vadd.f32 %v204_v18, %v203_v17  ;;  %s592_s24 = smov [#allocation7]  }
  0x50   : > { %v242_v52 = vstv %s241_s20  ;;  %v252_v56 = vstv %s393_s23  ;;  %p518_p0 = pnand %p517_p12, %p865_p13  ;;  %s520_s27 = sshll.u32 %s592_s24, 4  ;;  %s521_s27 = int_to_ptr.vmem [resolvable:$false] %s520_s27 }
  0x51   : > { %195 = vadd.xlane.f32.xlu1 %v194_v10  ;;  %s522_s8 = scalar_lea.vmem %s521_s27, 2048  ;;  %p523_p10 = scmp.lt.s32.totalorder %s807_s30, %s521_s27 }
  0x52   : > { %189 = vadd.xlane.f32.xlu0 %v188_v13  ;;  %p519_p3 = pneg %p518_p0  ;;  %p524_p5 = scmp.lt.s32.totalorder %s522_s8, %s516_s7 }
  0x54   : > { %p525_p1 = por %p524_p5, %p523_p10 }
  0x55   : > { %209 = vadd.xlane.f32.xlu1 %v208_v16 }
  0x56   : > { %206 = vadd.xlane.f32.xlu0 %v205_v19  ;;  %p526_p6 = pnand %p525_p1, %p519_p3 }
  0x59   : > { %215 = vadd.xlane.f32.xlu1 %v214_v22 }
  0x5a   : > { %212 = vadd.xlane.f32.xlu0 %v211_v23 }
  0xda   : > { %v193_v24 = vpop.xlane.xlu1 %192 }
  0xdb   : > { %v187_v25 = vpop.xlane.xlu0 %186  ;;  %v219_v31 = vmul.f32 0.00390625, %v193_v24 }
  0xdc   : > { %v217_v26 = vmul.f32 0.00390625, %v187_v25 }
  0xdd   : > { %v223_v39 = vmul.f32 %v219_v31, %v193_v24 }
  0xde   : > { %v196_v27 = vpop.xlane.xlu1 %195  ;;  %v221_v32 = vmul.f32 %v217_v26, %v187_v25 }
  0xdf   : > { %v190_v28 = vpop.xlane.xlu0 %189  ;;  %v220_v30 = vmul.f32 0.00390625, %v196_v27 }
  0xe0   : > { %v218_v29 = vmul.f32 0.00390625, %v190_v28 }
  0xe1   : > { %v224_v38 = vmul.f32 %v220_v30, %v196_v27 }
  0xe2   : > { %v222_v33 = vmul.f32 %v218_v29, %v190_v28  ;;  %v210_v34 = vpop.xlane.xlu1 %209 }
  0xe3   : > { %v207_v35 = vpop.xlane.xlu0 %206 }
  0xe4   : > { %v226_v36 = vsub.f32 %v210_v34, %v222_v33  ;;  %v225_v37 = vsub.f32 %v207_v35, %v221_v32 }
  0xe6   : > { %v230_v40 = vmul.f32 0.003921569, %v226_v36  ;;  %v229_v41 = vmul.f32 0.003921569, %v225_v37  ;;  %v216_v42 = vpop.xlane.xlu1 %215 }
  0xe7   : > { %v228_v43 = vsub.f32 %v216_v42, %v224_v38  ;;  %v213_v44 = vpop.xlane.xlu0 %212 }
  0xe8   : > { %v234_v45 = vmax.f32 %v230_v40, 0.0  ;;  %v233_v46 = vmax.f32 %v229_v41, 0.0  ;;  %v227_v47 = vsub.f32 %v213_v44, %v223_v39 }
  0xe9   : > { %v232_v48 = vmul.f32 0.003921569, %v228_v43 }
  0xea   : > { %465 = vrsqrt.f32 %v234_v45  ;;  %v231_v49 = vmul.f32 0.003921569, %v227_v47 }
  0xeb   : > { %467 = vrsqrt.f32 %v233_v46  ;;  %v236_v50 = vmax.f32 %v232_v48, 0.0 }
  0xec   : > { %v235_v51 = vmax.f32 %v231_v49, 0.0 }
  0xed   : > { %469 = vrsqrt.f32 %v236_v50 }
  0xee   : > { %471 = vrsqrt.f32 %v235_v51 }
  0xf4   : > { %v466_v53 = vpop.eup %465 }
  0xf5   : > { %v468_v54 = vpop.eup %467  ;;  %v244_v55 = vmul.f32 %v466_v53, %v242_v52 }
  0xf6   : > { %v243_v57 = vmul.f32 %v468_v54, %v242_v52 }
  0xf7   : > { %v470_v58 = vpop.eup %469  ;;  %v249_v59 = vmul.f32 %v244_v55, %v218_v29  ;;  %v259_v3 = vmul.f32 %v244_v55, %v767_v8  ;;  %v260_v7 = vmul.f32 %v244_v55, %v769_v9 }
  0xf8   : > { %v472_v60 = vpop.eup %471  ;;  %v248_v61 = vmul.f32 %v243_v57, %v217_v26  ;;  %v246_v62 = vmul.f32 %v470_v58, %v242_v52  ;;  %v257_v12 = vmul.f32 %v243_v57, %v755_v2  ;;  %v258_v13 = vmul.f32 %v243_v57, %v759_v4 }
  0xf9   : > { %v254_v63 = vsub.f32 %v252_v56, %v249_v59  ;;  %v245_v10 = vmul.f32 %v472_v60, %v242_v52 }
  0xfa   : > { %v253_v11 = vsub.f32 %v252_v56, %v248_v61  ;;  %v251_v14 = vmul.f32 %v246_v62, %v220_v30  ;;  %v263_v17 = vmul.f32 %v246_v62, %v761_v5  ;;  %v264_v9 = vmul.f32 %v246_v62, %v763_v6 }
  0xfb   : > { %v267_v15 = vadd.f32 %v259_v3, %v254_v63  ;;  %v268_v16 = vadd.f32 %v260_v7, %v254_v63  ;;  %v250_v18 = vmul.f32 %v245_v10, %v219_v31  ;;  %v261_v4 = vmul.f32 %v245_v10, %v751_v0 }
  0xfc   : > { %v265_v19 = vadd.f32 %v257_v12, %v253_v11  ;;  %v266_v8 = vadd.f32 %v258_v13, %v253_v11  ;;  %v256_v20 = vsub.f32 %v252_v56, %v251_v14  ;;  %v262_v21 = vmul.f32 %v245_v10, %v753_v1 }
  0xfd   : > { %275 = vst [vmem:[%s174_s29 + $0x10] sm:$0xff] %v267_v15  ;;  %276 = vst [vmem:[%s174_s29 + $0x18] sm:$0xff] %v268_v16  ;;  %v255_v2 = vsub.f32 %v252_v56, %v250_v18 }
  0xfe   : > { %273 = vst [vmem:[%s174_s29] sm:$0xff] %v265_v19  ;;  %274 = vst [vmem:[%s174_s29 + $0x8] sm:$0xff] %v266_v8  ;;  %v271_v5 = vadd.f32 %v263_v17, %v256_v20  ;;  %v272_v22 = vadd.f32 %v264_v9, %v256_v20 }
  0xff   : > { %v269_v6 = vadd.f32 %v261_v4, %v255_v2  ;;  %v270_v23 = vadd.f32 %v262_v21, %v255_v2 }
 0x100   : > { %279 = vst [vmem:[%s174_s29 + $0x30] sm:$0xff] %v271_v5  ;;  %280 = vst [vmem:[%s174_s29 + $0x38] sm:$0xff] %v272_v22 }
 0x101   : > { %277 = vst [vmem:[%s174_s29 + $0x20] sm:$0xff] %v269_v6  ;;  %278 = vst [vmem:[%s174_s29 + $0x28] sm:$0xff] %v270_v23 }
 0x102   : > { %529 = shalt.err (!%p526_p6)
}
 0x103   : > { %s530_s14 = scalar_lea.hbm %s805_s5, 1024  ;;  %s534_s3 = scalar_lea.hbm %s852_s2, 8192 }
 0x104   : > { %p531_p7 = scmp.ne.s32.totalorder %s805_s5, %s530_s14  ;;  %p535_p4 = scmp.lt.u32.totalorder %s805_s5, %s852_s2 }
 0x105   : > { %p536_p2 = scmp.lt.u32.totalorder %s534_s3, %s530_s14  ;;  %p538_p12 = scmp.lt.u32.totalorder %s530_s14, %s805_s5 }
 0x106   : > { %p532_p8 = pnand %p531_p7, %p865_p13 }
 0x107   : > { %p537_p11 = por %p536_p2, %p535_p4 }
 0x108   : > { %p533_p9 = pneg %p532_p8 }
 0x109   : > { %p539_p0 = por %p538_p12, %p537_p11 }
 0x10b   : > { %p540_p3 = pnand %p539_p0, %p533_p9 }
 0x10d   : > { %543 = shalt.err (!%p540_p3)
}
 0x10e   : > { %s593_s20 = smov 256   ;;  %s594_s23 = smov 16  }
 0x10f   : > { %410 = dma.vmem_to_hbm [thread:$0]  (%p865_p13), %s807_s30, 1024, %s805_s5, %s282_s6, %s593_s20, %s593_s20, %s594_s23  }
 0x110 PF: > { %p427_p10 = scmp.ge.s32.totalorder %s586_s12, 2  ;;  %s311_s19 = sand.u32 1, %s574_s9  }
 0x111   : > { %p866_p5 = scmp.ne.s32.totalorder %s859_s22, 0  ;;  %s312_s29 = scalar_lea.sflag [#allocation4], %s311_s19 }
 0x113   : > { %p421_p1 = pnand %p427_p10, %p866_p5 }
 0x115   : > { %569 = dma.done.wait (!%p421_p1), %s312_s29, 1024  }
 0x116   : > { %571 = vsyncadd (!%p421_p1), %s312_s29, 4294966272  ;;  %p16_p6 = scmp.ge.s32.totalorder %s635_s15, 10   ;;  %s867_s9 = smov %s578_s10 }
 0x117   : > { %s868_s10 = smov %s582_s11  ;;  %s869_s11 = smov %s647_s18 }
 0x118   : > { %s870_s12 = smov %s635_s15  ;;  %18 = sbr.rel (!%p16_p6) target bundleno = 6 (0x6), region = 78 }
 0x11f   :  { %317 = vsyncpa [#allocation3], 1 }
 0x120   :  { %319 = vsyncpa [#allocation3 + $0x1], 1 }
 0x121   :  { %320 = vsyncpa [#allocation4], 1 }
 0x122   :  { %322 = vsyncpa [#allocation4 + $0x1], 1 }
 0x123   :  { %323 = vsyncpa [#allocation5], 1 }
 0x124   :  { %325 = vsyncpa [#allocation5 + $0x1], 1 }

</bundles_post_ra>
